<compile_context>
chip_gen: v6e
topology: v6e:2x2x1
jax: 0.10.0
libtpu: 0.0.40
codegen_flags: <defaults>
</compile_context>

<pallas_src>
import jax
import jax.numpy as jnp
from jax import lax
from jax.experimental import pallas as pl
from jax.experimental.pallas import tpu as pltpu


def _round_up(x, m):
    return ((x + m - 1) // m) * m


def _qfunc_kernel(s_ref, a_ref,
                  w1s_ref, w1a_ref, b1_ref,
                  w2_ref, b2_ref,
                  w3_ref, b3_ref,
                  w4t_ref, b4_ref,
                  out_ref):
    # Layer 1: fused "concat" -> two partial matmuls (both tiny K fit one MXU pass).
    h = (jnp.dot(s_ref[...], w1s_ref[...], preferred_element_type=jnp.float32)
         + jnp.dot(a_ref[...], w1a_ref[...], preferred_element_type=jnp.float32)
         + b1_ref[...])
    h = jnp.maximum(h, 0.0)

    h = jnp.dot(h, w2_ref[...], preferred_element_type=jnp.float32) + b2_ref[...]
    h = jnp.maximum(h, 0.0)

    h = jnp.dot(h, w3_ref[...], preferred_element_type=jnp.float32) + b3_ref[...]
    h = jnp.maximum(h, 0.0)

    # Output head: contract the hidden axis of both operands (w4t is [1, H] in torch
    # layout, h is [tile_b, H]) -> result is already lane-dense [1, tile_b].
    q = lax.dot_general(w4t_ref[...], h,
                        dimension_numbers=(((1,), (1,)), ((), ())),
                        preferred_element_type=jnp.float32)
    out_ref[...] = (q + b4_ref[...]).astype(out_ref.dtype)


def qfunc_forward(state, action, params, *, batch_tile=512):
    """Pallas implementation of QFunc.forward.

    state:  [B, state_dim] f32
    action: [B, action_dim] f32
    returns (q, q) with q: [B, 1] f32  (matches the torch module returning (out, out))
    """
    w1s, w1a, b1, w2, b2, w3, b3, w4t, b4 = params
    B, state_dim = state.shape
    action_dim = action.shape[1]
    H = w2.shape[0]

    # Batch tile: multiple of 128 (lane width of the transposed output block).
    tile_b = min(batch_tile, _round_up(B, 128))
    b_pad = _round_up(B, tile_b)
    if b_pad != B:
        state = jnp.pad(state, ((0, b_pad - B), (0, 0)))
        action = jnp.pad(action, ((0, b_pad - B), (0, 0)))
    n_tiles = b_pad // tile_b

    # Weights/biases: full-array blocks with a constant index_map -> DMA'd once,
    # resident in VMEM across the whole batch grid.
    def resident(shape):
        return pl.BlockSpec(shape, lambda i: (0,) * len(shape))

    out_row = pl.pallas_call(
        _qfunc_kernel,
        out_shape=jax.ShapeDtypeStruct((1, b_pad), jnp.float32),
        grid=(n_tiles,),
        in_specs=[
            pl.BlockSpec((tile_b, state_dim), lambda i: (i, 0)),   # state tile streams
            pl.BlockSpec((tile_b, action_dim), lambda i: (i, 0)),  # action tile streams
            resident((state_dim, H)),   # w1s
            resident((action_dim, H)),  # w1a
            resident((1, H)),           # b1
            resident((H, H)),           # w2
            resident((1, H)),           # b2
            resident((H, H)),           # w3
            resident((1, H)),           # b3
            resident((1, H)),           # w4t (torch layout [out=1, in=H])
            resident((1, 1)),           # b4
        ],
        out_specs=pl.BlockSpec((1, tile_b), lambda i: (0, i)),      # lane-dense q tile
        compiler_params=pltpu.CompilerParams(
            dimension_semantics=("parallel",)),                     # v7x: 2 TCs split batch
    )(state, action, w1s, w1a, b1, w2, b2, w3, b3, w4t, b4)

    q = out_row[0, :B].reshape(B, 1)
    # Module returns the same tensor twice (single shared network, not a real twin-Q).
    return q, q


def init_qfunc_params(key, state_dim, action_dim, hidden_size):
    """Deterministic init mimicking torch.nn.Linear (uniform +/- 1/sqrt(fan_in)).

    W1..W3 stored as [in_features, out_features]; W4 kept in torch layout [1, H]
    (it is the LHS of the transposed head contraction); biases as [1, out].
    """
    in_dim = state_dim + action_dim

    def uniform(k, shape, fan_in):
        bound = 1.0 / jnp.sqrt(jnp.float32(fan_in))
        return jax.random.uniform(k, shape, jnp.float32, -bound, bound)

    k = jax.random.split(key, 8)
    w1 = uniform(k[0], (in_dim, hidden_size), in_dim)
    b1 = uniform(k[1], (1, hidden_size), in_dim)
    w2 = uniform(k[2], (hidden_size, hidden_size), hidden_size)
    b2 = uniform(k[3], (1, hidden_size), hidden_size)
    w3 = uniform(k[4], (hidden_size, hidden_size), hidden_size)
    b3 = uniform(k[5], (1, hidden_size), hidden_size)
    w4t = uniform(k[6], (1, hidden_size), hidden_size)
    b4 = uniform(k[7], (1, 1), hidden_size)
    w1s, w1a = w1[:state_dim], w1[state_dim:]
    return (w1s, w1a, b1, w2, b2, w3, b3, w4t, b4)


if __name__ == "__main__":
    # Small shapes consistent with the module: batch=2, state_dim=8, action_dim=4,
    # hidden=32.  (For real SAC workloads, hidden=128+ uses the MXU far better.)
    B, STATE_DIM, ACTION_DIM, HIDDEN = 2, 8, 4, 32

    key = jax.random.PRNGKey(0)
    k_params, k_state, k_action = jax.random.split(key, 3)

    params = init_qfunc_params(k_params, STATE_DIM, ACTION_DIM, HIDDEN)
    state = jax.random.normal(k_state, (B, STATE_DIM), jnp.float32)
    action = jax.random.normal(k_action, (B, ACTION_DIM), jnp.float32)

    q1, q2 = qfunc_forward(state, action, params)
    jax.block_until_ready((q1, q2))

    # Pure-JAX reference of the same math.
    def ref(state, action, params):
        w1s, w1a, b1, w2, b2, w3, b3, w4t, b4 = params
        h = jax.nn.relu(state @ w1s + action @ w1a + b1)
        h = jax.nn.relu(h @ w2 + b2)
        h = jax.nn.relu(h @ w3 + b3)
        return h @ w4t.T + b4

    q_ref = ref(state, action, params)
    assert q1.shape == (B, 1) and q2.shape == (B, 1)
    assert jnp.allclose(q1, q_ref, atol=1e-5, rtol=1e-5)
    assert jnp.array_equal(q1, q2)

    # Exercise the batched/streaming path (multi-tile grid + padding).
    B2 = 300
    ks, ka = jax.random.split(jax.random.PRNGKey(1))
    s2 = jax.random.normal(ks, (B2, STATE_DIM), jnp.float32)
    a2 = jax.random.normal(ka, (B2, ACTION_DIM), jnp.float32)
    q_big, _ = qfunc_forward(s2, a2, params, batch_tile=128)   # 3 grid steps
    jax.block_until_ready(q_big)
    assert q_big.shape == (B2, 1)
    assert jnp.allclose(q_big, ref(s2, a2, params), atol=1e-5, rtol=1e-5)

    print("KERNEL_OK")
</pallas_src>

<mosaic_0001>
module attributes {stable_mosaic.version = 11 : i64} {
  func.func @_qfunc_kernel(%arg0: i32, %arg1: memref<128x8xf32, #tpu.memory_space<vmem>>, %arg2: memref<128x4xf32, #tpu.memory_space<vmem>>, %arg3: memref<8x32xf32, #tpu.memory_space<vmem>>, %arg4: memref<4x32xf32, #tpu.memory_space<vmem>>, %arg5: memref<1x32xf32, #tpu.memory_space<vmem>>, %arg6: memref<32x32xf32, #tpu.memory_space<vmem>>, %arg7: memref<1x32xf32, #tpu.memory_space<vmem>>, %arg8: memref<32x32xf32, #tpu.memory_space<vmem>>, %arg9: memref<1x32xf32, #tpu.memory_space<vmem>>, %arg10: memref<1x32xf32, #tpu.memory_space<vmem>>, %arg11: memref<1x1xf32, #tpu.memory_space<vmem>>, %arg12: memref<1x128xf32, #tpu.memory_space<vmem>>) attributes {dimension_semantics = [#tpu.dimension_semantics<parallel>], iteration_bounds = array<i64: 1>, scalar_prefetch = 0 : i64, scratch_operands = 0 : i64, tpu.core_type = #tpu.core_type<tc>, window_params = [{transform_indices = @transform_0, window_bounds = array<i64: 128, 8>}, {transform_indices = @transform_1, window_bounds = array<i64: 128, 4>}, {pipeline_mode = #tpu.pipeline_mode<synchronous>, transform_indices = @transform_2, window_bounds = array<i64: 8, 32>}, {pipeline_mode = #tpu.pipeline_mode<synchronous>, transform_indices = @transform_3, window_bounds = array<i64: 4, 32>}, {pipeline_mode = #tpu.pipeline_mode<synchronous>, transform_indices = @transform_4, window_bounds = array<i64: 1, 32>}, {pipeline_mode = #tpu.pipeline_mode<synchronous>, transform_indices = @transform_5, window_bounds = array<i64: 32, 32>}, {pipeline_mode = #tpu.pipeline_mode<synchronous>, transform_indices = @transform_6, window_bounds = array<i64: 1, 32>}, {pipeline_mode = #tpu.pipeline_mode<synchronous>, transform_indices = @transform_7, window_bounds = array<i64: 32, 32>}, {pipeline_mode = #tpu.pipeline_mode<synchronous>, transform_indices = @transform_8, window_bounds = array<i64: 1, 32>}, {pipeline_mode = #tpu.pipeline_mode<synchronous>, transform_indices = @transform_9, window_bounds = array<i64: 1, 32>}, {pipeline_mode = #tpu.pipeline_mode<synchronous>, transform_indices = @transform_10, window_bounds = array<i64: 1, 1>}, {transform_indices = @transform_11, window_bounds = array<i64: 1, 128>}]} {
    %c0 = arith.constant 0 : index
    %c0_0 = arith.constant 0 : index
    %0 = vector.load %arg1[%c0, %c0_0] : memref<128x8xf32, #tpu.memory_space<vmem>>, vector<128x8xf32>
    %c0_1 = arith.constant 0 : index
    %c0_2 = arith.constant 0 : index
    %1 = vector.load %arg3[%c0_1, %c0_2] : memref<8x32xf32, #tpu.memory_space<vmem>>, vector<8x32xf32>
    %cst = arith.constant dense<0.000000e+00> : vector<128x32xf32>
    %2 = tpu.matmul %0, %1, %cst {dimension_numbers = #tpu.dot_dimension_numbers<[1], [0], [0], [1], [0, 0, 1, 1], [], []>} : vector<128x8xf32>, vector<8x32xf32>, vector<128x32xf32> -> vector<128x32xf32>
    %c0_3 = arith.constant 0 : index
    %c0_4 = arith.constant 0 : index
    %3 = vector.load %arg2[%c0_3, %c0_4] : memref<128x4xf32, #tpu.memory_space<vmem>>, vector<128x4xf32>
    %c0_5 = arith.constant 0 : index
    %c0_6 = arith.constant 0 : index
    %4 = vector.load %arg4[%c0_5, %c0_6] : memref<4x32xf32, #tpu.memory_space<vmem>>, vector<4x32xf32>
    %cst_7 = arith.constant dense<0.000000e+00> : vector<128x32xf32>
    %5 = tpu.matmul %3, %4, %cst_7 {dimension_numbers = #tpu.dot_dimension_numbers<[1], [0], [0], [1], [0, 0, 1, 1], [], []>} : vector<128x4xf32>, vector<4x32xf32>, vector<128x32xf32> -> vector<128x32xf32>
    %6 = arith.addf %2, %5 : vector<128x32xf32>
    %c0_8 = arith.constant 0 : index
    %c0_9 = arith.constant 0 : index
    %7 = vector.load %arg5[%c0_8, %c0_9] : memref<1x32xf32, #tpu.memory_space<vmem>>, vector<1x32xf32>
    %8 = vector.broadcast %7 : vector<1x32xf32> to vector<128x32xf32>
    %9 = arith.addf %6, %8 : vector<128x32xf32>
    %cst_10 = arith.constant 0.000000e+00 : f32
    %10 = vector.broadcast %cst_10 : f32 to vector<128x32xf32>
    %11 = arith.maximumf %9, %10 : vector<128x32xf32>
    %c0_11 = arith.constant 0 : index
    %c0_12 = arith.constant 0 : index
    %12 = vector.load %arg6[%c0_11, %c0_12] : memref<32x32xf32, #tpu.memory_space<vmem>>, vector<32x32xf32>
    %cst_13 = arith.constant dense<0.000000e+00> : vector<128x32xf32>
    %13 = tpu.matmul %11, %12, %cst_13 {dimension_numbers = #tpu.dot_dimension_numbers<[1], [0], [0], [1], [0, 0, 1, 1], [], []>} : vector<128x32xf32>, vector<32x32xf32>, vector<128x32xf32> -> vector<128x32xf32>
    %c0_14 = arith.constant 0 : index
    %c0_15 = arith.constant 0 : index
    %14 = vector.load %arg7[%c0_14, %c0_15] : memref<1x32xf32, #tpu.memory_space<vmem>>, vector<1x32xf32>
    %15 = vector.broadcast %14 : vector<1x32xf32> to vector<128x32xf32>
    %16 = arith.addf %13, %15 : vector<128x32xf32>
    %cst_16 = arith.constant 0.000000e+00 : f32
    %17 = vector.broadcast %cst_16 : f32 to vector<128x32xf32>
    %18 = arith.maximumf %16, %17 : vector<128x32xf32>
    %c0_17 = arith.constant 0 : index
    %c0_18 = arith.constant 0 : index
    %19 = vector.load %arg8[%c0_17, %c0_18] : memref<32x32xf32, #tpu.memory_space<vmem>>, vector<32x32xf32>
    %cst_19 = arith.constant dense<0.000000e+00> : vector<128x32xf32>
    %20 = tpu.matmul %18, %19, %cst_19 {dimension_numbers = #tpu.dot_dimension_numbers<[1], [0], [0], [1], [0, 0, 1, 1], [], []>} : vector<128x32xf32>, vector<32x32xf32>, vector<128x32xf32> -> vector<128x32xf32>
    %c0_20 = arith.constant 0 : index
    %c0_21 = arith.constant 0 : index
    %21 = vector.load %arg9[%c0_20, %c0_21] : memref<1x32xf32, #tpu.memory_space<vmem>>, vector<1x32xf32>
    %22 = vector.broadcast %21 : vector<1x32xf32> to vector<128x32xf32>
    %23 = arith.addf %20, %22 : vector<128x32xf32>
    %cst_22 = arith.constant 0.000000e+00 : f32
    %24 = vector.broadcast %cst_22 : f32 to vector<128x32xf32>
    %25 = arith.maximumf %23, %24 : vector<128x32xf32>
    %c0_23 = arith.constant 0 : index
    %c0_24 = arith.constant 0 : index
    %26 = vector.load %arg10[%c0_23, %c0_24] : memref<1x32xf32, #tpu.memory_space<vmem>>, vector<1x32xf32>
    %cst_25 = arith.constant dense<0.000000e+00> : vector<1x128xf32>
    %27 = tpu.matmul %26, %25, %cst_25 {dimension_numbers = #tpu.dot_dimension_numbers<[1], [1], [0], [0], [0, 0, 1, 0], [], []>} : vector<1x32xf32>, vector<128x32xf32>, vector<1x128xf32> -> vector<1x128xf32>
    %c0_26 = arith.constant 0 : index
    %c0_27 = arith.constant 0 : index
    %28 = vector.load %arg11[%c0_26, %c0_27] : memref<1x1xf32, #tpu.memory_space<vmem>>, vector<1x1xf32>
    %29 = vector.broadcast %28 : vector<1x1xf32> to vector<1x128xf32>
    %30 = arith.addf %27, %29 : vector<1x128xf32>
    %c0_28 = arith.constant 0 : index
    %c0_29 = arith.constant 0 : index
    %31 = vector.load %arg12[%c0_28, %c0_29] : memref<1x128xf32, #tpu.memory_space<vmem>>, vector<1x128xf32>
    tpu.vector_store %arg12[%c0_28, %c0_29], %30 {strides = array<i32>} : memref<1x128xf32, #tpu.memory_space<vmem>>, vector<1x128xf32>,
    return
  }
  func.func @transform_0(%arg0: i32) -> (i32, i32) {
    %c0_i32 = arith.constant 0 : i32
    %c0_i32_0 = arith.constant 0 : i32
    return %arg0, %c0_i32 : i32, i32
  }
  func.func @transform_1(%arg0: i32) -> (i32, i32) {
    %c0_i32 = arith.constant 0 : i32
    %c0_i32_0 = arith.constant 0 : i32
    return %arg0, %c0_i32 : i32, i32
  }
  func.func @transform_2(%arg0: i32) -> (i32, i32) {
    %c0_i32 = arith.constant 0 : i32
    %c0_i32_0 = arith.constant 0 : i32
    %c0_i32_1 = arith.constant 0 : i32
    return %c0_i32, %c0_i32_0 : i32, i32
  }
  func.func @transform_3(%arg0: i32) -> (i32, i32) {
    %c0_i32 = arith.constant 0 : i32
    %c0_i32_0 = arith.constant 0 : i32
    %c0_i32_1 = arith.constant 0 : i32
    return %c0_i32, %c0_i32_0 : i32, i32
  }
  func.func @transform_4(%arg0: i32) -> (i32, i32) {
    %c0_i32 = arith.constant 0 : i32
    %c0_i32_0 = arith.constant 0 : i32
    %c0_i32_1 = arith.constant 0 : i32
    return %c0_i32, %c0_i32_0 : i32, i32
  }
  func.func @transform_5(%arg0: i32) -> (i32, i32) {
    %c0_i32 = arith.constant 0 : i32
    %c0_i32_0 = arith.constant 0 : i32
    %c0_i32_1 = arith.constant 0 : i32
    return %c0_i32, %c0_i32_0 : i32, i32
  }
  func.func @transform_6(%arg0: i32) -> (i32, i32) {
    %c0_i32 = arith.constant 0 : i32
    %c0_i32_0 = arith.constant 0 : i32
    %c0_i32_1 = arith.constant 0 : i32
    return %c0_i32, %c0_i32_0 : i32, i32
  }
  func.func @transform_7(%arg0: i32) -> (i32, i32) {
    %c0_i32 = arith.constant 0 : i32
    %c0_i32_0 = arith.constant 0 : i32
    %c0_i32_1 = arith.constant 0 : i32
    return %c0_i32, %c0_i32_0 : i32, i32
  }
  func.func @transform_8(%arg0: i32) -> (i32, i32) {
    %c0_i32 = arith.constant 0 : i32
    %c0_i32_0 = arith.constant 0 : i32
    %c0_i32_1 = arith.constant 0 : i32
    return %c0_i32, %c0_i32_0 : i32, i32
  }
  func.func @transform_9(%arg0: i32) -> (i32, i32) {
    %c0_i32 = arith.constant 0 : i32
    %c0_i32_0 = arith.constant 0 : i32
    %c0_i32_1 = arith.constant 0 : i32
    return %c0_i32, %c0_i32_0 : i32, i32
  }
  func.func @transform_10(%arg0: i32) -> (i32, i32) {
    %c0_i32 = arith.constant 0 : i32
    %c0_i32_0 = arith.constant 0 : i32
    %c0_i32_1 = arith.constant 0 : i32
    return %c0_i32, %c0_i32_0 : i32, i32
  }
  func.func @transform_11(%arg0: i32) -> (i32, i32) {
    %c0_i32 = arith.constant 0 : i32
    %c0_i32_0 = arith.constant 0 : i32
    return %c0_i32, %arg0 : i32, i32
  }
}

</mosaic_0001>

<bundles_post_ra>
// kernel: tpu_custom_call.1
= control target key start
LH: loop header
LB: loop body
LE: loop exit
PB: predicated region body
PF: predicated region fallthrough
CT: control target
= control target key end

     0   :  { %s1802_s0 = inlined_call_operand.vmem [shape: f32[128,8], index: 0, kind: input, shape index: {}]   ;;  %s1803_s1 = inlined_call_operand.vmem [shape: f32[128,4], index: 1, kind: input, shape index: {}]   ;;  %s1804_s2 = inlined_call_operand.vmem [shape: f32[8,32], index: 2, kind: input, shape index: {}]   ;;  %s1805_s3 = inlined_call_operand.vmem [shape: f32[4,32], index: 3, kind: input, shape index: {}]   ;;  %s1806_s4 = inlined_call_operand.vmem [shape: f32[1,32], index: 4, kind: input, shape index: {}]   ;;  %s1807_s5 = inlined_call_operand.vmem [shape: f32[32,32], index: 5, kind: input, shape index: {}]   ;;  %s1808_s6 = inlined_call_operand.vmem [shape: f32[1,32], index: 6, kind: input, shape index: {}]   ;;  %s1809_s7 = inlined_call_operand.vmem [shape: f32[32,32], index: 7, kind: input, shape index: {}]   ;;  %s1810_s8 = inlined_call_operand.vmem [shape: f32[1,32], index: 8, kind: input, shape index: {}]   ;;  %s1811_s9 = inlined_call_operand.vmem [shape: f32[1,32], index: 9, kind: input, shape index: {}]   ;;  %s1812_s10 = inlined_call_operand.<no memory space> [shape: f32[1,1], index: 10, kind: input, shape index: {}]   ;;  %s1813_s11 = inlined_call_operand.hbm [shape: f32[1,128], index: 11, kind: output, shape index: {}]  }
   0x1   :  { %v16_v0 = vstv %s1812_s10 }
   0x2   :  { %17 = vst [vmem:[#allocation2] sm:$0x1] %v16_v0 }
   0x3   :  { %v74_v1 = vld [vmem:[%s1805_s3] sm:$0xf]  ;;  %vm124_vm0 = vcmask 1043456   ;;  %vm75_vm1 = vcmask 31744   ;;  %v67_v3 = vld [vmem:[%s1803_s1 + $0x48] sm:$0xff]  ;;  %v68_v5 = vld [vmem:[%s1803_s1 + $0x50] sm:$0xff] }
   0x4   :  { %v66_v2 = vld [vmem:[%s1803_s1 + $0x40] sm:$0xff]  ;;  %1421 = vmatprep.subr.msk.mxu1 %vm124_vm0, %v74_v1  ;;  %1270 = vmatprep.subr.msk.mxu0 %vm124_vm0, %v74_v1  ;;  %v59_v7 = vld [vmem:[%s1803_s1 + $0x8] sm:$0xff]  ;;  %v69_v8 = vld [vmem:[%s1803_s1 + $0x58] sm:$0xff] }
   0x5   :  { %1284 = vmatprep.mubr.msk.f32.mxu1 %vm75_vm1, %v66_v2  ;;  %v57_v4 = vld [vmem:[%s1804_s2] sm:$0xff]  ;;  %1422 = vmatpush3.msk.msra.mxu1 %vm124_vm0, %v74_v1  ;;  %v60_v9 = vld [vmem:[%s1803_s1 + $0x10] sm:$0xff]  ;;  %v61_v11 = vld [vmem:[%s1803_s1 + $0x18] sm:$0xff] }
   0x6   :  { %1285 = vmatmul.mubr.msk.f32.vlgmr.msra.gmra.mxu1 %vm75_vm1, %v67_v3  ;;  %1296 = vmatprep.subr.mxu1 %v57_v4  ;;  %v58_v6 = vld [vmem:[%s1803_s1] sm:$0xff]  ;;  %v71_v12 = vld [vmem:[%s1803_s1 + $0x68] sm:$0xff]  ;;  %v72_v14 = vld [vmem:[%s1803_s1 + $0x70] sm:$0xff] }
   0x7   :  { %1297 = vmatpush3.msra.mxu1 %v57_v4  ;;  %1287 = vmatprep.mubr.msk.f32.mxu1 %vm75_vm1, %v68_v5  ;;  %v70_v10 = vld [vmem:[%s1803_s1 + $0x60] sm:$0xff]  ;;  %v63_v15 = vld [vmem:[%s1803_s1 + $0x28] sm:$0xff] }
   0x8   :  { %1271 = vmatpush3.msk.msra.mxu0 %vm124_vm0, %v74_v1  ;;  %1272 = vmatprep.mubr.msk.f32.mxu0 %vm75_vm1, %v58_v6  ;;  %v62_v13 = vld [vmem:[%s1803_s1 + $0x20] sm:$0xff] }
   0x9   :  { %1273 = vmatmul.mubr.msk.f32.vlgmr.msra.gmra.mxu0 %vm75_vm1, %v59_v7 }
   0xa   :  { %1288 = vmatmul.mubr.msk.f32.gmra.mxu1 %vm75_vm1, %v69_v8  ;;  %1275 = vmatprep.mubr.msk.f32.mxu0 %vm75_vm1, %v60_v9 }
   0xb   :  { %1290 = vmatprep.mubr.msk.f32.mxu1 %vm75_vm1, %v70_v10 }
   0xd   :  { %1276 = vmatmul.mubr.msk.f32.gmra.mxu0 %vm75_vm1, %v61_v11 }
   0xe   :  { %1291 = vmatmul.mubr.msk.f32.gmra.mxu1 %vm75_vm1, %v71_v12  ;;  %1278 = vmatprep.mubr.msk.f32.mxu0 %vm75_vm1, %v62_v13 }
   0xf   :  { %18 = vsyncpa [#allocation4], 0  ;;  %1293 = vmatprep.mubr.msk.f32.mxu1 %vm75_vm1, %v72_v14  ;;  %v73_v16 = vld [vmem:[%s1803_s1 + $0x78] sm:$0xff]  ;;  %v64_v17 = vld [vmem:[%s1803_s1 + $0x30] sm:$0xff]  ;;  %vm273_vm2 = vcmask 64512   ;;  %vm517_vm3 = vcmask 261120  }
  0x10   :  { %v41_v18 = vld [vmem:[%s1802_s0] sm:$0xff]  ;;  %v65_v19 = vld [vmem:[%s1803_s1 + $0x38] sm:$0xff]  ;;  %v42_v20 = vld [vmem:[%s1802_s0 + $0x8] sm:$0xff]  ;;  %vm1451_vm4 = vmmov 0   ;;  %s1453_s15 = smov [#allocation3]  }
  0x11   :  { %1279 = vmatmul.mubr.msk.f32.gmra.mxu0 %vm75_vm1, %v63_v15  ;;  %v43_v21 = vld [vmem:[%s1802_s0 + $0x10] sm:$0xff]  ;;  %v44_v22 = vld [vmem:[%s1802_s0 + $0x18] sm:$0xff]  ;;  %v45_v23 = vld [vmem:[%s1802_s0 + $0x20] sm:$0xff]  ;;  %s1086_s16 = sshll.u32 %s1453_s15, 4  ;;  %s1087_s16 = int_to_ptr.vmem [resolvable:$true] %s1086_s16 }
  0x12   :  { %1294 = vmatmul.mubr.msk.f32.gmra.mxu1 %vm75_vm1, %v73_v16  ;;  %1281 = vmatprep.mubr.msk.f32.mxu0 %vm75_vm1, %v64_v17  ;;  %v46_v24 = vld [vmem:[%s1802_s0 + $0x28] sm:$0xff]  ;;  %v47_v25 = vld [vmem:[%s1802_s0 + $0x30] sm:$0xff]  ;;  %v48_v26 = vld [vmem:[%s1802_s0 + $0x38] sm:$0xff]  ;;  %s1428_s17 = scalar_lea.vmem %s1087_s16, 16  ;;  %s1432_s18 = scalar_lea.vmem %s1087_s16, 32 }
  0x13   :  { %1298 = vmatprep.mubr.msk.f32.mxu1 %vm273_vm2, %v41_v18  ;;  %v49_v27 = vld [vmem:[%s1802_s0 + $0x40] sm:$0xff]  ;;  %v50_v28 = vld [vmem:[%s1802_s0 + $0x48] sm:$0xff]  ;;  %v51_v29 = vld [vmem:[%s1802_s0 + $0x50] sm:$0xff]  ;;  %p1429_p0 = scmp.ne.s32.totalorder %s1087_s16, %s1428_s17  ;;  %p1433_p1 = scmp.lt.s32.totalorder %s1087_s16, %s1087_s16 }
  0x14   :  { %v52_v30 = vld [vmem:[%s1802_s0 + $0x58] sm:$0xff]  ;;  %v53_v31 = vld [vmem:[%s1802_s0 + $0x60] sm:$0xff]  ;;  %v54_v32 = vld [vmem:[%s1802_s0 + $0x68] sm:$0xff]  ;;  %p1434_p2 = scmp.lt.s32.totalorder %s1432_s18, %s1428_s17 }
  0x15   :  { %1282 = vmatmul.mubr.msk.f32.gmra.mxu0 %vm75_vm1, %v65_v19  ;;  %v55_v33 = vld [vmem:[%s1802_s0 + $0x70] sm:$0xff]  ;;  %v56_v34 = vld [vmem:[%s1802_s0 + $0x78] sm:$0xff]  ;;  %v507_v37 = vld [vmem:[%s1807_s5 + $0x8] sm:$0xff] }
  0x16   :  { %1299 = vmatmul.mubr.msk.f32.vlgmr.msra.gmra.mxu1 %vm273_vm2, %v42_v20  ;;  %v509_v35 = vld [vmem:[%s1807_s5 + $0x18] sm:$0xff]  ;;  %v508_v36 = vld [vmem:[%s1807_s5 + $0x10] sm:$0xff]  ;;  %v506_v38 = vld [vmem:[%s1807_s5] sm:$0xff]  ;;  %p1435_p3 = por %p1434_p2, %p1433_p1 }
  0x17   :  { %1301 = vmatprep.mubr.msk.f32.mxu1 %vm273_vm2, %v43_v21  ;;  %1322 = vmatprep.subr.mxu0 %v509_v35  ;;  %v730_v39 = vld [vmem:[%s1809_s7 + $0x18] sm:$0xff]  ;;  %v729_v40 = vld [vmem:[%s1809_s7 + $0x10] sm:$0xff]  ;;  %v728_v41 = vld [vmem:[%s1809_s7 + $0x8] sm:$0xff] }
  0x18   :  { %1323 = vmatpush3.msra.mxu0 %v509_v35  ;;  %1354 = vmatprep.subr.mxu1 %v730_v39  ;;  %v1689_v56 = vld [vmem:[%s1806_s4] ss:$0 sm:$0xff]  ;;  %p1436_p4 = pnand %p1435_p3, %p1429_p0 }
  0x19   :  { %1324 = vmatprep.subr.mxu0 %v508_v36  ;;  %1355 = vmatpush3.msra.mxu1 %v730_v39 }
  0x1a   :  { %1302 = vmatmul.mubr.msk.f32.gmra.mxu1 %vm273_vm2, %v44_v22  ;;  %1325 = vmatpush3.msra.mxu0 %v508_v36 }
  0x1b   :  { %1304 = vmatprep.mubr.msk.f32.mxu1 %vm273_vm2, %v45_v23  ;;  %1326 = vmatprep.subr.mxu0 %v507_v37 }
  0x1c   :  { %1327 = vmatpush3.msra.mxu0 %v507_v37  ;;  %1356 = vmatprep.subr.mxu1 %v729_v40 }
  0x1d   :  { %1328 = vmatprep.subr.mxu0 %v506_v38  ;;  %1357 = vmatpush3.msra.mxu1 %v729_v40 }
  0x1e   :  { %1305 = vmatmul.mubr.msk.f32.gmra.mxu1 %vm273_vm2, %v46_v24  ;;  %1329 = vmatpush3.msra.mxu0 %v506_v38 }
  0x1f   :  { %1307 = vmatprep.mubr.msk.f32.mxu1 %vm273_vm2, %v47_v25  ;;  %1358 = vmatprep.subr.mxu1 %v728_v41 }
  0x20   :  { %1359 = vmatpush3.msra.mxu1 %v728_v41 }
  0x22   :  { %1308 = vmatmul.mubr.msk.f32.gmra.mxu1 %vm273_vm2, %v48_v26 }
  0x23   :  { %1310 = vmatprep.mubr.msk.f32.mxu1 %vm273_vm2, %v49_v27 }
  0x26   :  { %1311 = vmatmul.mubr.msk.f32.gmra.mxu1 %vm273_vm2, %v50_v28 }
  0x27   :  { %1313 = vmatprep.mubr.msk.f32.mxu1 %vm273_vm2, %v51_v29 }
  0x2a   :  { %1314 = vmatmul.mubr.msk.f32.gmra.mxu1 %vm273_vm2, %v52_v30 }
  0x2b   :  { %1316 = vmatprep.mubr.msk.f32.mxu1 %vm273_vm2, %v53_v31 }
  0x2e   :  { %1317 = vmatmul.mubr.msk.f32.gmra.mxu1 %vm273_vm2, %v54_v32 }
  0x2f   :  { %1319 = vmatprep.mubr.msk.f32.mxu1 %vm273_vm2, %v55_v33 }
  0x32   :  { %1320 = vmatmul.mubr.msk.f32.gmra.mxu1 %vm273_vm2, %v56_v34 }
  0xc6   :  { %v1286_v42 = vpop.f32.mrf.mxu1 }
  0xc8   :  { %v234_v43 = vpop.f32.mrf.mxu1 }
  0xc9   :  { %v1274_v44 = vpop.f32.mrf.mxu0 }
  0xca   :  { %v1289_v45 = vpop.f32.mrf.mxu1 }
  0xcb   :  { %v194_v47 = vpop.f32.mrf.mxu0 }
  0xcc   :  { %v1676_v46 = vpop.f32.mrf.mxu1 }
  0xcd   :  { %v1277_v50 = vpop.f32.mrf.mxu0 }
  0xce   :  { %v1678_v48 = vpop.f32.mrf.mxu1 }
  0xcf   :  { %v204_v53 = vpop.f32.mrf.mxu0 }
  0xd0   :  { %v1680_v49 = vpop.f32.mrf.mxu1 }
  0xd1   :  { %v1280_v58 = vpop.f32.mrf.mxu0 }
  0xd2   :  { %v1682_v51 = vpop.f32.mrf.mxu1 }
  0xd3   :  { %v214_v1 = vpop.f32.mrf.mxu0 }
  0xd4   :  { %v1684_v52 = vpop.f32.mrf.mxu1 }
  0xd5   :  { %v1283_v10 = vpop.f32.mrf.mxu0 }
  0xd6   :  { %v1300_v54 = vpop.f32.mrf.mxu1 }
  0xd7   :  { %v394_v55 = vadd.f32 %v1300_v54, %v1274_v44  ;;  %v224_v18 = vpop.f32.mrf.mxu0 }
  0xd8   :  { %v388_v57 = vpop.f32.mrf.mxu1 }
  0xd9   :  { %v389_v59 = vadd.f32 %v388_v57, %v194_v47  ;;  %v475_v60 = vadd.f32 %v1689_v56, %v394_v55 }
  0xda   :  { %v1303_v61 = vpop.f32.mrf.mxu1 }
  0xdb   :  { %v474_v62 = vadd.f32 %v1689_v56, %v389_v59  ;;  %v404_v63 = vadd.f32 %v1303_v61, %v1277_v50  ;;  %v491_v4 = vmax.f32 %v475_v60, 0.0 }
  0xdc   :  { %v398_v0 = vpop.f32.mrf.mxu1 }
  0xdd   :  { %v490_v2 = vmax.f32 %v474_v62, 0.0  ;;  %v399_v3 = vadd.f32 %v398_v0, %v204_v53  ;;  %v477_v5 = vadd.f32 %v1689_v56, %v404_v63 }
  0xde   :  { %v1306_v6 = vpop.f32.mrf.mxu1 }
  0xdf   :  { %v476_v7 = vadd.f32 %v1689_v56, %v399_v3  ;;  %v414_v8 = vadd.f32 %v1306_v6, %v1280_v58  ;;  %1330 = vmatprep.mubr.msk.f32.mxu0 %vm517_vm3, %v490_v2  ;;  %v493_v13 = vmax.f32 %v477_v5, 0.0 }
  0xe0   :  { %v408_v9 = vpop.f32.mrf.mxu1  ;;  %1331 = vmatmul.mubr.msk.f32.vlgmr.msra.gmra.mxu0 %vm517_vm3, %v491_v4 }
  0xe1   :  { %v492_v11 = vmax.f32 %v476_v7, 0.0  ;;  %v409_v12 = vadd.f32 %v408_v9, %v214_v1  ;;  %v479_v14 = vadd.f32 %v1689_v56, %v414_v8 }
  0xe2   :  { %v1309_v15 = vpop.f32.mrf.mxu1 }
  0xe3   :  { %v478_v16 = vadd.f32 %v1689_v56, %v409_v12  ;;  %v424_v17 = vadd.f32 %v1309_v15, %v1283_v10  ;;  %1333 = vmatprep.mubr.msk.f32.mxu0 %vm517_vm3, %v492_v11  ;;  %v495_v22 = vmax.f32 %v479_v14, 0.0 }
  0xe4   :  { %v418_v19 = vpop.f32.mrf.mxu1  ;;  %1334 = vmatmul.mubr.msk.f32.gmra.mxu0 %vm517_vm3, %v493_v13 }
  0xe5   :  { %v494_v20 = vmax.f32 %v478_v16, 0.0  ;;  %v419_v21 = vadd.f32 %v418_v19, %v224_v18  ;;  %v481_v23 = vadd.f32 %v1689_v56, %v424_v17 }
  0xe6   :  { %v1312_v24 = vpop.f32.mrf.mxu1 }
  0xe7   :  { %v480_v25 = vadd.f32 %v1689_v56, %v419_v21  ;;  %v434_v26 = vadd.f32 %v1312_v24, %v1286_v42  ;;  %1336 = vmatprep.mubr.msk.f32.mxu0 %vm517_vm3, %v494_v20  ;;  %v497_v30 = vmax.f32 %v481_v23, 0.0 }
  0xe8   :  { %v428_v27 = vpop.f32.mrf.mxu1  ;;  %1337 = vmatmul.mubr.msk.f32.gmra.mxu0 %vm517_vm3, %v495_v22 }
  0xe9   :  { %v496_v28 = vmax.f32 %v480_v25, 0.0  ;;  %v429_v29 = vadd.f32 %v428_v27, %v234_v43  ;;  %v483_v31 = vadd.f32 %v1689_v56, %v434_v26 }
  0xea   :  { %v1315_v32 = vpop.f32.mrf.mxu1 }
  0xeb   :  { %v482_v33 = vadd.f32 %v1689_v56, %v429_v29  ;;  %v444_v34 = vadd.f32 %v1315_v32, %v1289_v45  ;;  %1339 = vmatprep.mubr.msk.f32.mxu0 %vm517_vm3, %v496_v28  ;;  %v499_v38 = vmax.f32 %v483_v31, 0.0 }
  0xec   :  { %v438_v35 = vpop.f32.mrf.mxu1  ;;  %1340 = vmatmul.mubr.msk.f32.gmra.mxu0 %vm517_vm3, %v497_v30 }
  0xed   :  { %v498_v36 = vmax.f32 %v482_v33, 0.0  ;;  %v439_v37 = vadd.f32 %v438_v35, %v1676_v46  ;;  %v485_v39 = vadd.f32 %v1689_v56, %v444_v34 }
  0xee   :  { %v1318_v40 = vpop.f32.mrf.mxu1 }
  0xef   :  { %v484_v41 = vadd.f32 %v1689_v56, %v439_v37  ;;  %v454_v42 = vadd.f32 %v1318_v40, %v1678_v48  ;;  %1342 = vmatprep.mubr.msk.f32.mxu0 %vm517_vm3, %v498_v36  ;;  %v501_v47 = vmax.f32 %v485_v39, 0.0 }
  0xf0   :  { %v448_v43 = vpop.f32.mrf.mxu1  ;;  %1343 = vmatmul.mubr.msk.f32.gmra.mxu0 %vm517_vm3, %v499_v38 }
  0xf1   :  { %v500_v44 = vmax.f32 %v484_v41, 0.0  ;;  %v449_v45 = vadd.f32 %v448_v43, %v1680_v49  ;;  %v487_v50 = vadd.f32 %v1689_v56, %v454_v42 }
  0xf2   :  { %v1321_v46 = vpop.f32.mrf.mxu1 }
  0xf3   :  { %v486_v53 = vadd.f32 %v1689_v56, %v449_v45  ;;  %v464_v54 = vadd.f32 %v1321_v46, %v1682_v51  ;;  %1345 = vmatprep.mubr.msk.f32.mxu0 %vm517_vm3, %v500_v44  ;;  %v503_v58 = vmax.f32 %v487_v50, 0.0  ;;  %v727_v51 = vld [vmem:[%s1809_s7] sm:$0xff]  ;;  %v1450_v45 = vmov 0.0  }
  0xf4   :  { %v458_v55 = vpop.f32.mrf.mxu1  ;;  %1346 = vmatmul.mubr.msk.f32.gmra.mxu0 %vm517_vm3, %v501_v47  ;;  %1360 = vmatprep.subr.mxu1 %v727_v51  ;;  %v948_v47 = vld [vmem:[#allocation2] sm:$0x1]  ;;  %v1452_v50 = vmov 0  }
  0xf5   :  { %v502_v48 = vmax.f32 %v486_v53, 0.0  ;;  %v459_v57 = vadd.f32 %v458_v55, %v1684_v52  ;;  %v489_v59 = vadd.f32 %v1689_v56, %v464_v54  ;;  %1361 = vmatpush3.msra.mxu1 %v727_v51  ;;  %v1128_v52 = vld [vmem:[%s1808_s6] ss:$0 sm:$0xff]  ;;  %1386 = vmatprep.subr.mxu0 %v1450_v45 }
  0xf6   :  { %1427 = vset.pattern.permute.xlu0 %v1452_v50 }
  0xf7   :  { %v488_v49 = vadd.f32 %v1689_v56, %v459_v57  ;;  %1348 = vmatprep.mubr.msk.f32.mxu0 %vm517_vm3, %v502_v48  ;;  %v505_v61 = vmax.f32 %v489_v59, 0.0  ;;  %951 = vperm.xlu0 %1427, %v948_v47  }
  0xf8   :  { %1349 = vmatmul.mubr.msk.f32.gmra.mxu0 %vm517_vm3, %v503_v58 }
  0xf9   :  { %v504_v60 = vmax.f32 %v488_v49, 0.0 }
  0xfb   :  { %1351 = vmatprep.mubr.msk.f32.mxu0 %vm517_vm3, %v504_v60 }
  0xfc   :  { %1352 = vmatmul.mubr.msk.f32.gmra.mxu0 %vm517_vm3, %v505_v61 }
  0xfd   :  { %1418 = vmatprep.mubr.msk.f32.mxu0 %vm1451_vm4, %v1450_v45 }
 0x1a0   :  { %v1332_v56 = vpop.f32.mrf.mxu0 }
 0x1a1   :  { %v638_v62 = vadd.f32 %v1332_v56, %v1128_v52 }
 0x1a2   :  { %v632_v63 = vpop.f32.mrf.mxu0 }
 0x1a3   :  { %v633_v0 = vadd.f32 %v1128_v52, %v632_v63  ;;  %v712_v3 = vmax.f32 %v638_v62, 0.0  ;;  %v1145_v62 = vld [vmem:[%s1810_s8] ss:$0 sm:$0xff] }
 0x1a4   :  { %v1335_v1 = vpop.f32.mrf.mxu0 }
 0x1a5   :  { %v711_v2 = vmax.f32 %v633_v0, 0.0  ;;  %v648_v4 = vadd.f32 %v1335_v1, %v1128_v52 }
 0x1a6   :  { %v642_v5 = vpop.f32.mrf.mxu0 }
 0x1a7   :  { %v643_v6 = vadd.f32 %v1128_v52, %v642_v5  ;;  %1362 = vmatprep.mubr.msk.f32.mxu1 %vm517_vm3, %v711_v2  ;;  %v714_v9 = vmax.f32 %v648_v4, 0.0 }
 0x1a8   :  { %v1338_v7 = vpop.f32.mrf.mxu0  ;;  %1363 = vmatmul.mubr.msk.f32.vlgmr.msra.gmra.mxu1 %vm517_vm3, %v712_v3 }
 0x1a9   :  { %v713_v8 = vmax.f32 %v643_v6, 0.0  ;;  %v658_v10 = vadd.f32 %v1338_v7, %v1128_v52 }
 0x1aa   :  { %v652_v11 = vpop.f32.mrf.mxu0 }
 0x1ab   :  { %v653_v12 = vadd.f32 %v1128_v52, %v652_v11  ;;  %1365 = vmatprep.mubr.msk.f32.mxu1 %vm517_vm3, %v713_v8  ;;  %v716_v15 = vmax.f32 %v658_v10, 0.0 }
 0x1ac   :  { %v1341_v13 = vpop.f32.mrf.mxu0  ;;  %1366 = vmatmul.mubr.msk.f32.gmra.mxu1 %vm517_vm3, %v714_v9 }
 0x1ad   :  { %v715_v14 = vmax.f32 %v653_v12, 0.0  ;;  %v668_v16 = vadd.f32 %v1341_v13, %v1128_v52 }
 0x1ae   :  { %v662_v17 = vpop.f32.mrf.mxu0 }
 0x1af   :  { %v663_v18 = vadd.f32 %v1128_v52, %v662_v17  ;;  %1368 = vmatprep.mubr.msk.f32.mxu1 %vm517_vm3, %v715_v14  ;;  %v718_v21 = vmax.f32 %v668_v16, 0.0 }
 0x1b0   :  { %v1344_v19 = vpop.f32.mrf.mxu0  ;;  %1369 = vmatmul.mubr.msk.f32.gmra.mxu1 %vm517_vm3, %v716_v15 }
 0x1b1   :  { %v717_v20 = vmax.f32 %v663_v18, 0.0  ;;  %v678_v22 = vadd.f32 %v1344_v19, %v1128_v52 }
 0x1b2   :  { %v672_v23 = vpop.f32.mrf.mxu0 }
 0x1b3   :  { %v673_v24 = vadd.f32 %v1128_v52, %v672_v23  ;;  %1371 = vmatprep.mubr.msk.f32.mxu1 %vm517_vm3, %v717_v20  ;;  %v720_v27 = vmax.f32 %v678_v22, 0.0 }
 0x1b4   :  { %v1347_v25 = vpop.f32.mrf.mxu0  ;;  %1372 = vmatmul.mubr.msk.f32.gmra.mxu1 %vm517_vm3, %v718_v21 }
 0x1b5   :  { %v719_v26 = vmax.f32 %v673_v24, 0.0  ;;  %v688_v28 = vadd.f32 %v1347_v25, %v1128_v52 }
 0x1b6   :  { %v682_v29 = vpop.f32.mrf.mxu0 }
 0x1b7   :  { %v683_v30 = vadd.f32 %v1128_v52, %v682_v29  ;;  %1374 = vmatprep.mubr.msk.f32.mxu1 %vm517_vm3, %v719_v26  ;;  %v722_v33 = vmax.f32 %v688_v28, 0.0 }
 0x1b8   :  { %v1350_v31 = vpop.f32.mrf.mxu0  ;;  %1375 = vmatmul.mubr.msk.f32.gmra.mxu1 %vm517_vm3, %v720_v27 }
 0x1b9   :  { %v721_v32 = vmax.f32 %v683_v30, 0.0  ;;  %v698_v34 = vadd.f32 %v1350_v31, %v1128_v52 }
 0x1ba   :  { %v692_v35 = vpop.f32.mrf.mxu0 }
 0x1bb   :  { %v693_v36 = vadd.f32 %v1128_v52, %v692_v35  ;;  %1377 = vmatprep.mubr.msk.f32.mxu1 %vm517_vm3, %v721_v32  ;;  %v724_v39 = vmax.f32 %v698_v34, 0.0  ;;  %v954_v34 = vlaneseq }
 0x1bc   :  { %v1353_v37 = vpop.f32.mrf.mxu0  ;;  %1378 = vmatmul.mubr.msk.f32.gmra.mxu1 %vm517_vm3, %v722_v33  ;;  %v947_v33 = vld [vmem:[%s1811_s9] sm:$0x1] }
 0x1bd   :  { %v723_v38 = vmax.f32 %v693_v36, 0.0  ;;  %v708_v40 = vadd.f32 %v1353_v37, %v1128_v52  ;;  %v955_v35 = vshrl.u32 %v954_v34, 7  ;;  %v952_v37 = vpop.permute.xlu0 %951 }
 0x1be   :  { %v702_v41 = vpop.f32.mrf.mxu0 }
 0x1bf   :  { %v703_v42 = vadd.f32 %v1128_v52, %v702_v41  ;;  %1380 = vmatprep.mubr.msk.f32.mxu1 %vm517_vm3, %v723_v38  ;;  %v726_v44 = vmax.f32 %v708_v40, 0.0  ;;  %v956_v36 = vsub.s32 0, %v955_v35 }
 0x1c0   :  { %1381 = vmatmul.mubr.msk.f32.gmra.mxu1 %vm517_vm3, %v724_v39 }
 0x1c1   :  { %v725_v43 = vmax.f32 %v703_v42, 0.0  ;;  %v957_v38 = vrot.slane %v952_v37, %v956_v36 }
 0x1c3   :  { %1383 = vmatprep.mubr.msk.f32.mxu1 %vm517_vm3, %v725_v43 }
 0x1c4   :  { %1384 = vmatmul.mubr.msk.f32.gmra.mxu1 %vm517_vm3, %v726_v44 }
 0x268   :  { %v1752_v46 = vpop.f32.mrf.mxu1 }
 0x269   :  { %v858_v28 = vadd.f32 %v1752_v46, %v1145_v62 }
 0x26a   :  { %v1754_v53 = vpop.f32.mrf.mxu1 }
 0x26b   :  { %v932_v30 = vmax.f32 %v858_v28, 0.0  ;;  %v853_v31 = vadd.f32 %v1145_v62, %v1754_v53 }
 0x26c   :  { %v1367_v54 = vpop.f32.mrf.mxu1 }
 0x26d   :  { %v868_v24 = vadd.f32 %v1367_v54, %v1145_v62  ;;  %v931_v32 = vmax.f32 %v853_v31, 0.0 }
 0x26e   :  { %v1756_v55 = vpop.f32.mrf.mxu1 }
 0x26f   :  { %v934_v26 = vmax.f32 %v868_v24, 0.0  ;;  %v863_v27 = vadd.f32 %v1145_v62, %v1756_v55 }
 0x270   :  { %v1370_v48 = vpop.f32.mrf.mxu1 }
 0x271   :  { %v878_v20 = vadd.f32 %v1370_v48, %v1145_v62  ;;  %v933_v29 = vmax.f32 %v863_v27, 0.0 }
 0x272   :  { %v872_v57 = vpop.f32.mrf.mxu1 }
 0x273   :  { %v936_v22 = vmax.f32 %v878_v20, 0.0  ;;  %v873_v23 = vadd.f32 %v1145_v62, %v872_v57 }
 0x274   :  { %v1373_v58 = vpop.f32.mrf.mxu1 }
 0x275   :  { %v888_v16 = vadd.f32 %v1373_v58, %v1145_v62  ;;  %v935_v25 = vmax.f32 %v873_v23, 0.0 }
 0x276   :  { %v882_v59 = vpop.f32.mrf.mxu1 }
 0x277   :  { %v938_v18 = vmax.f32 %v888_v16, 0.0  ;;  %v883_v19 = vadd.f32 %v1145_v62, %v882_v59 }
 0x278   :  { %v1376_v49 = vpop.f32.mrf.mxu1 }
 0x279   :  { %v898_v12 = vadd.f32 %v1376_v49, %v1145_v62  ;;  %v937_v21 = vmax.f32 %v883_v19, 0.0 }
 0x27a   :  { %v892_v60 = vpop.f32.mrf.mxu1 }
 0x27b   :  { %v940_v14 = vmax.f32 %v898_v12, 0.0  ;;  %v893_v15 = vadd.f32 %v1145_v62, %v892_v60 }
 0x27c   :  { %v1379_v61 = vpop.f32.mrf.mxu1 }
 0x27d   :  { %v908_v8 = vadd.f32 %v1379_v61, %v1145_v62  ;;  %v939_v17 = vmax.f32 %v893_v15, 0.0 }
 0x27e   :  { %v902_v51 = vpop.f32.mrf.mxu1 }
 0x27f   :  { %v942_v10 = vmax.f32 %v908_v8, 0.0  ;;  %v903_v11 = vadd.f32 %v1145_v62, %v902_v51 }
 0x280   :  { %v1382_v52 = vpop.f32.mrf.mxu1 }
 0x281   :  { %v918_v4 = vadd.f32 %v1382_v52, %v1145_v62  ;;  %v941_v13 = vmax.f32 %v903_v11, 0.0 }
 0x282   :  { %v912_v56 = vpop.f32.mrf.mxu1 }
 0x283   :  { %v944_v6 = vmax.f32 %v918_v4, 0.0  ;;  %v913_v7 = vadd.f32 %v1145_v62, %v912_v56 }
 0x284   :  { %v1385_v63 = vpop.f32.mrf.mxu1 }
 0x285   :  { %v928_v0 = vadd.f32 %v1385_v63, %v1145_v62  ;;  %v943_v9 = vmax.f32 %v913_v7, 0.0 }
 0x286   :  { %v922_v1 = vpop.f32.mrf.mxu1 }
 0x287   :  { %v946_v2 = vmax.f32 %v928_v0, 0.0  ;;  %v923_v3 = vadd.f32 %v1145_v62, %v922_v1 }
 0x289   :  { %1387 = vmatpush3.xpose.msk.msra.mxu0 %vm517_vm3, %v946_v2  ;;  %v945_v5 = vmax.f32 %v923_v3, 0.0 }
 0x28a   :  { %1388 = vmatprep.subr.mxu0 %v1450_v45 }
 0x28d   :  { %1389 = vmatpush3.xpose.msk.msra.mxu0 %vm517_vm3, %v945_v5 }
 0x28e   :  { %1390 = vmatprep.subr.mxu0 %v1450_v45 }
 0x291   :  { %1391 = vmatpush3.xpose.msk.msra.mxu0 %vm517_vm3, %v944_v6 }
 0x292   :  { %1392 = vmatprep.subr.mxu0 %v1450_v45 }
 0x295   :  { %1393 = vmatpush3.xpose.msk.msra.mxu0 %vm517_vm3, %v943_v9 }
 0x296   :  { %1394 = vmatprep.subr.mxu0 %v1450_v45 }
 0x299   :  { %1395 = vmatpush3.xpose.msk.msra.mxu0 %vm517_vm3, %v942_v10 }
 0x29a   :  { %1396 = vmatprep.subr.mxu0 %v1450_v45 }
 0x29d   :  { %1397 = vmatpush3.xpose.msk.msra.mxu0 %vm517_vm3, %v941_v13 }
 0x29e   :  { %1398 = vmatprep.subr.mxu0 %v1450_v45 }
 0x2a1   :  { %1399 = vmatpush3.xpose.msk.msra.mxu0 %vm517_vm3, %v940_v14 }
 0x2a2   :  { %1400 = vmatprep.subr.mxu0 %v1450_v45 }
 0x2a5   :  { %1401 = vmatpush3.xpose.msk.msra.mxu0 %vm517_vm3, %v939_v17 }
 0x2a6   :  { %1402 = vmatprep.subr.mxu0 %v1450_v45 }
 0x2a9   :  { %1403 = vmatpush3.xpose.msk.msra.mxu0 %vm517_vm3, %v938_v18 }
 0x2aa   :  { %1404 = vmatprep.subr.mxu0 %v1450_v45 }
 0x2ad   :  { %1405 = vmatpush3.xpose.msk.msra.mxu0 %vm517_vm3, %v937_v21 }
 0x2ae   :  { %1406 = vmatprep.subr.mxu0 %v1450_v45 }
 0x2b1   :  { %1407 = vmatpush3.xpose.msk.msra.mxu0 %vm517_vm3, %v936_v22 }
 0x2b2   :  { %1408 = vmatprep.subr.mxu0 %v1450_v45 }
 0x2b5   :  { %1409 = vmatpush3.xpose.msk.msra.mxu0 %vm517_vm3, %v935_v25 }
 0x2b6   :  { %1410 = vmatprep.subr.mxu0 %v1450_v45 }
 0x2b9   :  { %1411 = vmatpush3.xpose.msk.msra.mxu0 %vm517_vm3, %v934_v26 }
 0x2ba   :  { %1412 = vmatprep.subr.mxu0 %v1450_v45 }
 0x2bd   :  { %1413 = vmatpush3.xpose.msk.msra.mxu0 %vm517_vm3, %v933_v29 }
 0x2be   :  { %1414 = vmatprep.subr.mxu0 %v1450_v45 }
 0x2c1   :  { %1415 = vmatpush3.xpose.msk.msra.mxu0 %vm517_vm3, %v932_v30 }
 0x2c2   :  { %1416 = vmatprep.subr.mxu0 %v1450_v45 }
 0x2c5   :  { %1417 = vmatpush3.xpose.msk.msra.mxu0 %vm517_vm3, %v931_v32 }
 0x2c8   :  { %1419 = vmatmul.mubr.msk.f32.vlgmr.msra.gmra.mxu0 %vm517_vm3, %v947_v33 }
 0x388   :  { %v1075_v39 = vpop.f32.mrf.mxu0 }
 0x389   :  { %v1076_v40 = vadd.f32 %v1075_v39, %v957_v38 }
 0x38a   :  { %v1420_v41 = vpop.f32.mrf.mxu0 }
 0x38b   :  { %1079 = vst [vmem:[#allocation3] sm:$0x1] %v1076_v40 }
 0x38c   :  { %1439 = shalt.err (!%p1436_p4)
}
 0x38d   :  { %1089 = dma.vmem_to_hbm [thread:$0]  %s1087_s16, 16, %s1813_s11, [#allocation4]  }
 0x38e   :  { %1448 = dma.done.wait [#allocation4], 16  }
 0x38f   :  { %1449 = vsyncadd [#allocation4], 4294967280 }
 0x390   :  { %1093 = vsyncpa [#allocation4], 1 }

</bundles_post_ra>
